<compile_context>
chip_gen: v5e
topology: v5e:2x2
jax: 0.10.0
libtpu: 0.0.40
codegen_flags: <defaults>
</compile_context>

<pallas_src>
import numpy as np

import jax
import jax.numpy as jnp
from jax.experimental import pallas as pl
from jax.experimental.pallas import tpu as pltpu

OUTPUT_SIZE = 8  # output_size argument of FRAP

_PAIRS = ((0, 4), (0, 1), (4, 5), (1, 5), (2, 6), (2, 3), (6, 7), (3, 7))


def _relu(x):
    return jnp.maximum(x, 0.0)


# -----------------------------------------------------------------------------------
# Selector constant folding the pair-sum + pairwise-z build + raw .view(B,32,7,8).
#
# With pd = PAIR @ d (pairwise demand, (8,16)) the reinterpreted conv input is
#   z_conv[ch, hh, ww] = pd[rsel(n), half(n)*8 + ww],  n = ch*7 + hh,
#   row = n//32, j = (n%32)//4, q = n%4;
#   q<2:  rsel = row + (row>=j), half = q;   q>=2: rsel = j, half = q-2.
# Folding PAIR and the conv_pair weight wp (20,32) gives one dense operand
#   V[8*hb + p, 20*hh + o] = sum_{ch: half(ch,hh)=hb} wp[o,ch] * PAIR[rsel(ch,hh), p]
# so that  zp_pre[ww, 20*hh + o] = (D16 @ V)[ww, 20*hh + o] + bp[o]
# with D16[ww, 8*hb + p] = d[p, hb*8 + ww]  (two sublane halves of d^T, lane-concatenated).
# -----------------------------------------------------------------------------------
def _build_selector():
    pair = np.zeros((8, 8), np.float32)
    for r, (a, b) in enumerate(_PAIRS):
        pair[r, a] += 1.0
        pair[r, b] += 1.0
    sel = np.zeros((16, 7, 32), np.float32)   # [8*hb + p, hh, ch]
    for ch in range(32):
        for hh in range(7):
            n = ch * 7 + hh
            row, rem = divmod(n, 32)
            j, q = divmod(rem, 4)
            if q < 2:
                rsel = row + (1 if row >= j else 0)
                hb = q
            else:
                rsel = j
                hb = q - 2
            sel[8 * hb:8 * hb + 8, hh, ch] = pair[rsel]
    return sel


_SEL_NP = _build_selector()


# ------------------------------------ kernel ------------------------------------
def frap_fused_kernel(state_ref, mlp_ref, emb_ref, v_ref, y_ref, w1_ref, w2_ref,
                      q1_ref, q2_ref, q_ref):
    f32 = jnp.float32
    st = state_ref[...]          # (2, 8)  row0 = state[B-1, :8], row1 = state[B-1, 8:16]
    mp = mlp_ref[...]            # (32, 8) per-phase MLP weights, phases on lanes

    x_v = st[0:1, :]
    x_p = st[1:2, :]

    # ---- per-phase demand MLPs, vectorized over the 8 phases along the lane axis ----
    h1v = _relu(x_v * mp[0:2, :] + mp[2:4, :])                                   # (2, 8)
    h2v = _relu(mp[4:8, :] * h1v[0:1, :] + mp[8:12, :] * h1v[1:2, :]
                + mp[12:16, :])                                                  # (4, 8)
    h1p = _relu(x_p * mp[16:18, :] + mp[18:20, :])                               # (2, 8)
    h2p = _relu(mp[20:24, :] * h1p[0:1, :] + mp[24:28, :] * h1p[1:2, :]
                + mp[28:32, :])                                                  # (4, 8)
    x_cat = jnp.concatenate([h2v, h2p], axis=0)                                  # (8, 8) [feat, phase]

    # embedding Linear(8,16)+ReLU in transposed form: d_t[dim, phase]
    emb = emb_ref[...]                                                           # (16, 9)
    d_t = _relu(jnp.dot(emb[:, 0:8], x_cat, preferred_element_type=f32)
                + emb[:, 8:9])                                                   # (16, 8)

    # D16[w, 8*hb + p] = d[p, hb*8 + w]; rows 8..15 = zero-z path (the PyTorch bug):
    # all batch rows except the last see an all-zero z, so they ride on idle sublanes.
    d16 = jnp.concatenate([d_t[0:8, :], d_t[8:16, :]], axis=1)                   # (8, 16)
    d16x = jnp.concatenate([d16, jnp.zeros_like(d16)], axis=0)                   # (16, 16)

    yb = y_ref[...]                                                              # (11, 140)
    y16 = jnp.concatenate([yb[0:8, :], yb[0:8, :]], axis=0)                      # (16, 140) mask resp.
    bp_row = yb[8:9, :]                                                          # (1, 140)

    # conv_pair (pair-sum + .view + 1x1 conv folded into V) + ReLU, then mask multiply
    zp = _relu(jnp.dot(d16x, v_ref[...], preferred_element_type=f32) + bp_row)   # (16, 140)
    r = zp * y16                                                                 # (16, 140)

    # conv_competition: Conv2d(20,8,1x1)+ReLU, Conv2d(8,1,1x1)+ReLU (block-diagonal weights)
    bc1 = yb[9:10, 0:56]                                                         # (1, 56)
    c1 = _relu(jnp.dot(r, w1_ref[...], preferred_element_type=f32) + bc1)        # (16, 56)
    bc2 = yb[10:11, 0:1]                                                         # (1, 1)
    c2 = _relu(jnp.dot(c1, w2_ref[...], preferred_element_type=f32) + bc2)       # (16, 7)

    # torch.sum(results, 2): sum over the 7 height rows == lane reduction (XLU, not MXU)
    pooled = jnp.sum(c2, axis=1, keepdims=True)                                  # (16, 1)
    # column 0 -> last batch row, column 1 -> zero-z path (all other batch rows)
    pooled2 = jnp.concatenate([pooled[0:8, :], pooled[8:16, :]], axis=1)         # (8, 2)

    # Qnetwork: Linear(8,16)+ReLU, Dropout(identity), Linear(16,out)+ReLU  (column form)
    q1w = q1_ref[...]                                                            # (16, 9)
    q1 = _relu(jnp.dot(q1w[:, 0:8], pooled2, preferred_element_type=f32)
               + q1w[:, 8:9])                                                    # (16, 2)
    q2w = q2_ref[...]                                                            # (out, 17)
    q_ref[...] = _relu(jnp.dot(q2w[:, 0:16], q1, preferred_element_type=f32)
                       + q2w[:, 16:17])                                          # (out, 2)


# ------------------------------------ wrapper ------------------------------------
def _pack_inputs(state, p):
    """Wrapper-side packing of weights/constants. O(weight-size) work, no O(B) traffic."""
    B = state.shape[0]
    f32 = jnp.float32

    # only the LAST batch element's demand path survives the reproduced PyTorch bug
    s_last = state[B - 1].astype(f32)
    state2 = jnp.stack([s_last[0:8], s_last[8:16]], axis=0)                     # (2, 8)

    # per-phase MLP weights, phases on lanes
    mlp_pack = jnp.concatenate(
        [p['wv1'].T, p['bv1'].T, p['wv2'][0].T, p['wv2'][1].T, p['bv2'].T,
         p['wp1'].T, p['bp1'].T, p['wp2'][0].T, p['wp2'][1].T, p['bp2'].T],
        axis=0).astype(f32)                                                     # (32, 8)

    # embedding weight (torch layout (16,8)) and bias column
    emb_pack = jnp.concatenate([p['weT'].T, p['be'].T], axis=1).astype(f32)     # (16, 9)

    # pair-sum + .view + conv_pair folded into one dense operand
    vpack = jnp.einsum('mhc,oc->mho', jnp.asarray(_SEL_NP),
                       p['wp']).reshape(16, 140).astype(f32)                    # (16, 140)

    # conv_mask_pair(mask) is input independent -> hoisted out of the kernel
    y = _relu(p['wm'][:, :, None] * p['mask78'][None, :, :] + p['bm'][:, :, None])  # (20,7,8)
    y_wide = jnp.transpose(y, (2, 1, 0)).reshape(8, 140)                        # [w, 20*h + o]
    bp_wide = jnp.tile(p['bp'].reshape(1, 20), (1, 7))                          # (1, 140)
    bc1_wide = jnp.tile(p['bc1'].reshape(1, 8), (1, 7))                         # (1, 56)
    row_bc1 = jnp.concatenate([bc1_wide, jnp.zeros((1, 84), f32)], axis=1)
    row_bc2 = jnp.concatenate([p['bc2'].reshape(1, 1), jnp.zeros((1, 139), f32)], axis=1)
    ypack = jnp.concatenate([y_wide, bp_wide, row_bc1, row_bc2], axis=0)        # (11, 140)

    # conv_competition as small block-diagonal matmuls in the wide layout
    eye7 = jnp.eye(7, dtype=f32)
    w1bd = jnp.kron(eye7, p['wc1'].T).astype(f32)                               # (140, 56)
    w2bd = jnp.kron(eye7, p['wc2'].T).astype(f32)                               # (56, 7)

    # Q-network weights in column form
    q1pack = jnp.concatenate([p['wq1T'].T, p['bq1'].T], axis=1).astype(f32)     # (16, 9)
    q2pack = jnp.concatenate([p['wq2T'].T, p['bq2'].T], axis=1).astype(f32)     # (out, 17)

    return (state2, mlp_pack, emb_pack, vpack, ypack, w1bd, w2bd, q1pack, q2pack)


try:  # explicit VMEM residency for every (tiny) operand; defaults do the same if unavailable
    _VMEM_SPEC = pl.BlockSpec(memory_space=pltpu.MemorySpace.VMEM)
except AttributeError:
    _VMEM_SPEC = pl.BlockSpec()


def frap_forward(state, params):
    B = state.shape[0]
    out = params['wq2T'].shape[1]
    inputs = _pack_inputs(state, params)

    flops = 2 * (16 * 8 * 8 + 16 * 16 * 140 + 16 * 140 * 56 + 16 * 56 * 7
                 + 16 * 8 * 2 + out * 16 * 2)
    bytes_accessed = sum(int(np.prod(x.shape)) * 4 for x in inputs) + out * 2 * 4

    qcols = pl.pallas_call(
        frap_fused_kernel,
        out_shape=jax.ShapeDtypeStruct((out, 2), jnp.float32),
        in_specs=[_VMEM_SPEC] * len(inputs),
        out_specs=_VMEM_SPEC,
        cost_estimate=pl.CostEstimate(flops=flops, transcendentals=0,
                                      bytes_accessed=bytes_accessed),
    )(*inputs)

    # column 0 = Q(last batch element), column 1 = Q(zero-z) for every other batch row
    q_last = qcols[:, 0][None, :]
    q_zero = qcols[:, 1][None, :]
    is_last = (jnp.arange(B) == B - 1)[:, None]
    return jnp.where(is_last, q_last, q_zero)


# ----------------------- deterministic parameter initialization -----------------------
def init_params(key, output_size):
    def uniform(k, shape, fan_in):
        bound = 1.0 / float(fan_in) ** 0.5
        return jax.random.uniform(k, shape, jnp.float32, -bound, bound)

    keys = iter(jax.random.split(key, 32))
    p = {}
    # 8 demand_model_vehicle MLPs: Linear(1,2)+ReLU, Linear(2,4)+ReLU (stacked over i)
    p['wv1'] = uniform(next(keys), (8, 2), 1)
    p['bv1'] = uniform(next(keys), (8, 2), 1)
    p['wv2'] = uniform(next(keys), (2, 8, 4), 2)   # wv2[k, i, o] = W2_i[o, k]
    p['bv2'] = uniform(next(keys), (8, 4), 2)
    # 8 demand_model_phase MLPs
    p['wp1'] = uniform(next(keys), (8, 2), 1)
    p['bp1'] = uniform(next(keys), (8, 2), 1)
    p['wp2'] = uniform(next(keys), (2, 8, 4), 2)
    p['bp2'] = uniform(next(keys), (8, 4), 2)
    # embedding Linear(8, 16)
    p['weT'] = uniform(next(keys), (8, 16), 8)
    p['be'] = uniform(next(keys), (1, 16), 8)
    # conv_pair Conv2d(32, 20, 1x1)
    p['wp'] = uniform(next(keys), (20, 32), 32)
    p['bp'] = uniform(next(keys), (20, 1), 32)
    # conv_mask_pair Conv2d(1, 20, 1x1)
    p['wm'] = uniform(next(keys), (20, 1), 1)
    p['bm'] = uniform(next(keys), (20, 1), 1)
    # conv_competition Conv2d(20, 8, 1x1), Conv2d(8, 1, 1x1)
    p['wc1'] = uniform(next(keys), (8, 20), 20)
    p['bc1'] = uniform(next(keys), (8, 1), 20)
    p['wc2'] = uniform(next(keys), (1, 8), 8)
    p['bc2'] = uniform(next(keys), (1, 1), 8)
    # Qnetwork Linear(8, 16), Linear(16, output_size)
    p['wq1T'] = uniform(next(keys), (8, 16), 8)
    p['bq1'] = uniform(next(keys), (1, 16), 8)
    p['wq2T'] = uniform(next(keys), (16, output_size), 16)
    p['bq2'] = uniform(next(keys), (1, output_size), 16)
    # fixed phase-competition mask (values from the module), .view(1,1,7,8) as (7,8)
    mask_vals = jnp.array([
        [0.5, 0.5, 1.0, 1.0, 1.0, 1.0, 1.0],
        [0.5, 1.0, 0.5, 1.0, 1.0, 1.0, 1.0],
        [0.5, 1.0, 0.5, 1.0, 1.0, 1.0, 1.0],
        [1.0, 0.5, 0.5, 1.0, 1.0, 1.0, 1.0],
        [1.0, 1.0, 1.0, 1.0, 0.5, 0.5, 1.0],
        [1.0, 1.0, 1.0, 1.0, 0.5, 1.0, 0.5],
        [1.0, 1.0, 1.0, 1.0, 0.5, 1.0, 0.5],
        [1.0, 1.0, 1.0, 1.0, 1.0, 0.5, 0.5]], dtype=jnp.float32)
    p['mask78'] = mask_vals.reshape(7, 8)          # raw .view reinterpretation
    return p


# --------------------------- pure-JAX reference (mirrors PyTorch) ---------------------------
def frap_reference(state, p):
    B = state.shape[0]
    z = None
    for k in range(B):
        demand = []
        for i in range(8):
            xv = state[k, i]
            h1 = jnp.maximum(xv * p['wv1'][i] + p['bv1'][i], 0.0)
            h2 = jnp.maximum(h1[0] * p['wv2'][0, i] + h1[1] * p['wv2'][1, i] + p['bv2'][i], 0.0)
            xp = state[k, 8 + i]
            g1 = jnp.maximum(xp * p['wp1'][i] + p['bp1'][i], 0.0)
            g2 = jnp.maximum(g1[0] * p['wp2'][0, i] + g1[1] * p['wp2'][1, i] + p['bp2'][i], 0.0)
            x = jnp.concatenate([h2, g2])
            demand.append(jnp.maximum(x @ p['weT'] + p['be'][0], 0.0))
        phase_demand = [demand[a] + demand[b] for a, b in _PAIRS]
        z = jnp.zeros((B, 7, 8, 32), jnp.float32)     # re-created per k, as in PyTorch
        for j in range(8):
            for i in range(8):
                if i == j:
                    continue
                row = i - 1 if i > j else i
                z = z.at[k, row, j].set(jnp.concatenate([phase_demand[i], phase_demand[j]]))
    z = z.reshape(B, 32, 7, 8)
    zp = jnp.maximum(jnp.einsum('oc,bchw->bohw', p['wp'], z) + p['bp'].reshape(1, 20, 1, 1), 0.0)
    mask = p['mask78'].reshape(1, 1, 7, 8)
    y = jnp.maximum(p['wm'].reshape(1, 20, 1, 1) * mask + p['bm'].reshape(1, 20, 1, 1), 0.0)
    r = zp * y
    c1 = jnp.maximum(jnp.einsum('oc,bchw->bohw', p['wc1'], r) + p['bc1'].reshape(1, 8, 1, 1), 0.0)
    c2 = jnp.maximum(jnp.einsum('oc,bchw->bohw', p['wc2'], c1) + p['bc2'].reshape(1, 1, 1, 1), 0.0)
    res = jnp.sum(c2, axis=2).reshape(B, 8)
    q1 = jnp.maximum(res @ p['wq1T'] + p['bq1'], 0.0)
    return jnp.maximum(q1 @ p['wq2T'] + p['bq2'], 0.0)


if __name__ == "__main__":
    key = jax.random.PRNGKey(0)
    pkey, skey = jax.random.split(key)
    params = init_params(pkey, OUTPUT_SIZE)

    B = 2
    state = jax.random.uniform(skey, (B, 16), jnp.float32, 0.0, 5.0)

    q = jax.jit(frap_forward)(state, params)
    q = jax.block_until_ready(q)
    assert q.shape == (B, OUTPUT_SIZE)

    q_ref = frap_reference(state, params)
    if not bool(jnp.allclose(q, q_ref, rtol=5e-4, atol=1e-3)):
        raise AssertionError(f"mismatch:\nkernel={q}\nref={q_ref}")

    print("KERNEL_OK")
</pallas_src>

<mosaic_0001>
module attributes {stable_mosaic.version = 11 : i64} {
  func.func @frap_fused_kernel(%arg0: memref<2x8xf32, #tpu.memory_space<vmem>>, %arg1: memref<32x8xf32, #tpu.memory_space<vmem>>, %arg2: memref<16x9xf32, #tpu.memory_space<vmem>>, %arg3: memref<16x140xf32, #tpu.memory_space<vmem>>, %arg4: memref<11x140xf32, #tpu.memory_space<vmem>>, %arg5: memref<140x56xf32, #tpu.memory_space<vmem>>, %arg6: memref<56x7xf32, #tpu.memory_space<vmem>>, %arg7: memref<16x9xf32, #tpu.memory_space<vmem>>, %arg8: memref<8x17xf32, #tpu.memory_space<vmem>>, %arg9: memref<8x2xf32, #tpu.memory_space<vmem>>) attributes {dimension_semantics = [], scalar_prefetch = 0 : i64, scratch_operands = 0 : i64, tpu.core_type = #tpu.core_type<tc>} {
    %c0 = arith.constant 0 : index
    %c0_0 = arith.constant 0 : index
    %0 = vector.load %arg0[%c0, %c0_0] : memref<2x8xf32, #tpu.memory_space<vmem>>, vector<2x8xf32>
    %c0_1 = arith.constant 0 : index
    %c0_2 = arith.constant 0 : index
    %1 = vector.load %arg1[%c0_1, %c0_2] : memref<32x8xf32, #tpu.memory_space<vmem>>, vector<32x8xf32>
    %2 = vector.extract_strided_slice %0 {offsets = [0, 0], sizes = [1, 8], strides = [1, 1]} : vector<2x8xf32> to vector<1x8xf32>
    %3 = vector.extract_strided_slice %0 {offsets = [1, 0], sizes = [1, 8], strides = [1, 1]} : vector<2x8xf32> to vector<1x8xf32>
    %4 = vector.extract_strided_slice %1 {offsets = [0, 0], sizes = [2, 8], strides = [1, 1]} : vector<32x8xf32> to vector<2x8xf32>
    %5 = vector.broadcast %2 : vector<1x8xf32> to vector<2x8xf32>
    %6 = arith.mulf %5, %4 : vector<2x8xf32>
    %7 = vector.extract_strided_slice %1 {offsets = [2, 0], sizes = [2, 8], strides = [1, 1]} : vector<32x8xf32> to vector<2x8xf32>
    %8 = arith.addf %6, %7 : vector<2x8xf32>
    %cst = arith.constant 0.000000e+00 : f32
    %9 = vector.broadcast %cst : f32 to vector<2x8xf32>
    %10 = arith.maximumf %8, %9 : vector<2x8xf32>
    %11 = vector.extract_strided_slice %1 {offsets = [4, 0], sizes = [4, 8], strides = [1, 1]} : vector<32x8xf32> to vector<4x8xf32>
    %12 = vector.extract_strided_slice %10 {offsets = [0, 0], sizes = [1, 8], strides = [1, 1]} : vector<2x8xf32> to vector<1x8xf32>
    %13 = vector.broadcast %12 : vector<1x8xf32> to vector<4x8xf32>
    %14 = arith.mulf %11, %13 : vector<4x8xf32>
    %15 = vector.extract_strided_slice %1 {offsets = [8, 0], sizes = [4, 8], strides = [1, 1]} : vector<32x8xf32> to vector<4x8xf32>
    %16 = vector.extract_strided_slice %10 {offsets = [1, 0], sizes = [1, 8], strides = [1, 1]} : vector<2x8xf32> to vector<1x8xf32>
    %17 = vector.broadcast %16 : vector<1x8xf32> to vector<4x8xf32>
    %18 = arith.mulf %15, %17 : vector<4x8xf32>
    %19 = arith.addf %14, %18 : vector<4x8xf32>
    %20 = vector.extract_strided_slice %1 {offsets = [12, 0], sizes = [4, 8], strides = [1, 1]} : vector<32x8xf32> to vector<4x8xf32>
    %21 = arith.addf %19, %20 : vector<4x8xf32>
    %cst_3 = arith.constant 0.000000e+00 : f32
    %22 = vector.broadcast %cst_3 : f32 to vector<4x8xf32>
    %23 = arith.maximumf %21, %22 : vector<4x8xf32>
    %24 = vector.extract_strided_slice %1 {offsets = [16, 0], sizes = [2, 8], strides = [1, 1]} : vector<32x8xf32> to vector<2x8xf32>
    %25 = vector.broadcast %3 : vector<1x8xf32> to vector<2x8xf32>
    %26 = arith.mulf %25, %24 : vector<2x8xf32>
    %27 = vector.extract_strided_slice %1 {offsets = [18, 0], sizes = [2, 8], strides = [1, 1]} : vector<32x8xf32> to vector<2x8xf32>
    %28 = arith.addf %26, %27 : vector<2x8xf32>
    %cst_4 = arith.constant 0.000000e+00 : f32
    %29 = vector.broadcast %cst_4 : f32 to vector<2x8xf32>
    %30 = arith.maximumf %28, %29 : vector<2x8xf32>
    %31 = vector.extract_strided_slice %1 {offsets = [20, 0], sizes = [4, 8], strides = [1, 1]} : vector<32x8xf32> to vector<4x8xf32>
    %32 = vector.extract_strided_slice %30 {offsets = [0, 0], sizes = [1, 8], strides = [1, 1]} : vector<2x8xf32> to vector<1x8xf32>
    %33 = vector.broadcast %32 : vector<1x8xf32> to vector<4x8xf32>
    %34 = arith.mulf %31, %33 : vector<4x8xf32>
    %35 = vector.extract_strided_slice %1 {offsets = [24, 0], sizes = [4, 8], strides = [1, 1]} : vector<32x8xf32> to vector<4x8xf32>
    %36 = vector.extract_strided_slice %30 {offsets = [1, 0], sizes = [1, 8], strides = [1, 1]} : vector<2x8xf32> to vector<1x8xf32>
    %37 = vector.broadcast %36 : vector<1x8xf32> to vector<4x8xf32>
    %38 = arith.mulf %35, %37 : vector<4x8xf32>
    %39 = arith.addf %34, %38 : vector<4x8xf32>
    %40 = vector.extract_strided_slice %1 {offsets = [28, 0], sizes = [4, 8], strides = [1, 1]} : vector<32x8xf32> to vector<4x8xf32>
    %41 = arith.addf %39, %40 : vector<4x8xf32>
    %cst_5 = arith.constant 0.000000e+00 : f32
    %42 = vector.broadcast %cst_5 : f32 to vector<4x8xf32>
    %43 = arith.maximumf %41, %42 : vector<4x8xf32>
    %44 = tpu.concatenate %23, %43 in 0 : vector<4x8xf32>, vector<4x8xf32> -> vector<8x8xf32>
    %c0_6 = arith.constant 0 : index
    %c0_7 = arith.constant 0 : index
    %45 = vector.load %arg2[%c0_6, %c0_7] : memref<16x9xf32, #tpu.memory_space<vmem>>, vector<16x9xf32>
    %46 = vector.extract_strided_slice %45 {offsets = [0, 0], sizes = [16, 8], strides = [1, 1]} : vector<16x9xf32> to vector<16x8xf32>
    %cst_8 = arith.constant dense<0.000000e+00> : vector<16x8xf32>
    %47 = tpu.matmul %46, %44, %cst_8 {dimension_numbers = #tpu.dot_dimension_numbers<[1], [0], [0], [1], [0, 0, 1, 1], [], []>} : vector<16x8xf32>, vector<8x8xf32>, vector<16x8xf32> -> vector<16x8xf32>
    %48 = vector.extract_strided_slice %45 {offsets = [0, 8], sizes = [16, 1], strides = [1, 1]} : vector<16x9xf32> to vector<16x1xf32>
    %49 = vector.broadcast %48 : vector<16x1xf32> to vector<16x8xf32>
    %50 = arith.addf %47, %49 : vector<16x8xf32>
    %cst_9 = arith.constant 0.000000e+00 : f32
    %51 = vector.broadcast %cst_9 : f32 to vector<16x8xf32>
    %52 = arith.maximumf %50, %51 : vector<16x8xf32>
    %53 = vector.extract_strided_slice %52 {offsets = [0, 0], sizes = [8, 8], strides = [1, 1]} : vector<16x8xf32> to vector<8x8xf32>
    %54 = vector.extract_strided_slice %52 {offsets = [8, 0], sizes = [8, 8], strides = [1, 1]} : vector<16x8xf32> to vector<8x8xf32>
    %55 = tpu.concatenate %53, %54 in 1 : vector<8x8xf32>, vector<8x8xf32> -> vector<8x16xf32>
    %cst_10 = arith.constant 0.000000e+00 : f32
    %56 = vector.broadcast %cst_10 : f32 to vector<8x16xf32>
    %57 = tpu.concatenate %55, %56 in 0 : vector<8x16xf32>, vector<8x16xf32> -> vector<16x16xf32>
    %c0_11 = arith.constant 0 : index
    %c0_12 = arith.constant 0 : index
    %58 = vector.load %arg4[%c0_11, %c0_12] : memref<11x140xf32, #tpu.memory_space<vmem>>, vector<11x140xf32>
    %59 = vector.extract_strided_slice %58 {offsets = [0, 0], sizes = [8, 140], strides = [1, 1]} : vector<11x140xf32> to vector<8x140xf32>
    %60 = vector.extract_strided_slice %58 {offsets = [0, 0], sizes = [8, 140], strides = [1, 1]} : vector<11x140xf32> to vector<8x140xf32>
    %61 = tpu.concatenate %59, %60 in 0 : vector<8x140xf32>, vector<8x140xf32> -> vector<16x140xf32>
    %62 = vector.extract_strided_slice %58 {offsets = [8, 0], sizes = [1, 140], strides = [1, 1]} : vector<11x140xf32> to vector<1x140xf32>
    %c0_13 = arith.constant 0 : index
    %c0_14 = arith.constant 0 : index
    %63 = vector.load %arg3[%c0_13, %c0_14] : memref<16x140xf32, #tpu.memory_space<vmem>>, vector<16x140xf32>
    %cst_15 = arith.constant dense<0.000000e+00> : vector<16x140xf32>
    %64 = tpu.matmul %57, %63, %cst_15 {dimension_numbers = #tpu.dot_dimension_numbers<[1], [0], [0], [1], [0, 0, 1, 1], [], []>} : vector<16x16xf32>, vector<16x140xf32>, vector<16x140xf32> -> vector<16x140xf32>
    %65 = vector.broadcast %62 : vector<1x140xf32> to vector<16x140xf32>
    %66 = arith.addf %64, %65 : vector<16x140xf32>
    %cst_16 = arith.constant 0.000000e+00 : f32
    %67 = vector.broadcast %cst_16 : f32 to vector<16x140xf32>
    %68 = arith.maximumf %66, %67 : vector<16x140xf32>
    %69 = arith.mulf %68, %61 : vector<16x140xf32>
    %70 = vector.extract_strided_slice %58 {offsets = [9, 0], sizes = [1, 56], strides = [1, 1]} : vector<11x140xf32> to vector<1x56xf32>
    %c0_17 = arith.constant 0 : index
    %c0_18 = arith.constant 0 : index
    %71 = vector.load %arg5[%c0_17, %c0_18] : memref<140x56xf32, #tpu.memory_space<vmem>>, vector<140x56xf32>
    %cst_19 = arith.constant dense<0.000000e+00> : vector<16x56xf32>
    %72 = tpu.matmul %69, %71, %cst_19 {dimension_numbers = #tpu.dot_dimension_numbers<[1], [0], [0], [1], [0, 0, 1, 1], [], []>} : vector<16x140xf32>, vector<140x56xf32>, vector<16x56xf32> -> vector<16x56xf32>
    %73 = vector.broadcast %70 : vector<1x56xf32> to vector<16x56xf32>
    %74 = arith.addf %72, %73 : vector<16x56xf32>
    %cst_20 = arith.constant 0.000000e+00 : f32
    %75 = vector.broadcast %cst_20 : f32 to vector<16x56xf32>
    %76 = arith.maximumf %74, %75 : vector<16x56xf32>
    %77 = vector.extract_strided_slice %58 {offsets = [10, 0], sizes = [1, 1], strides = [1, 1]} : vector<11x140xf32> to vector<1x1xf32>
    %c0_21 = arith.constant 0 : index
    %c0_22 = arith.constant 0 : index
    %78 = vector.load %arg6[%c0_21, %c0_22] : memref<56x7xf32, #tpu.memory_space<vmem>>, vector<56x7xf32>
    %cst_23 = arith.constant dense<0.000000e+00> : vector<16x7xf32>
    %79 = tpu.matmul %76, %78, %cst_23 {dimension_numbers = #tpu.dot_dimension_numbers<[1], [0], [0], [1], [0, 0, 1, 1], [], []>} : vector<16x56xf32>, vector<56x7xf32>, vector<16x7xf32> -> vector<16x7xf32>
    %80 = vector.broadcast %77 : vector<1x1xf32> to vector<16x7xf32>
    %81 = arith.addf %79, %80 : vector<16x7xf32>
    %cst_24 = arith.constant 0.000000e+00 : f32
    %82 = vector.broadcast %cst_24 : f32 to vector<16x7xf32>
    %83 = arith.maximumf %81, %82 : vector<16x7xf32>
    %cst_25 = arith.constant dense<0.000000e+00> : vector<16xf32>
    %84 = vector.multi_reduction <add>, %83, %cst_25 [1] : vector<16x7xf32> to vector<16xf32>
    %85 = vector.shape_cast %84 : vector<16xf32> to vector<16x1xf32>
    %86 = vector.extract_strided_slice %85 {offsets = [0, 0], sizes = [8, 1], strides = [1, 1]} : vector<16x1xf32> to vector<8x1xf32>
    %87 = vector.extract_strided_slice %85 {offsets = [8, 0], sizes = [8, 1], strides = [1, 1]} : vector<16x1xf32> to vector<8x1xf32>
    %88 = tpu.concatenate %86, %87 in 1 : vector<8x1xf32>, vector<8x1xf32> -> vector<8x2xf32>
    %c0_26 = arith.constant 0 : index
    %c0_27 = arith.constant 0 : index
    %89 = vector.load %arg7[%c0_26, %c0_27] : memref<16x9xf32, #tpu.memory_space<vmem>>, vector<16x9xf32>
    %90 = vector.extract_strided_slice %89 {offsets = [0, 0], sizes = [16, 8], strides = [1, 1]} : vector<16x9xf32> to vector<16x8xf32>
    %cst_28 = arith.constant dense<0.000000e+00> : vector<16x2xf32>
    %91 = tpu.matmul %90, %88, %cst_28 {dimension_numbers = #tpu.dot_dimension_numbers<[1], [0], [0], [1], [0, 0, 1, 1], [], []>} : vector<16x8xf32>, vector<8x2xf32>, vector<16x2xf32> -> vector<16x2xf32>
    %92 = vector.extract_strided_slice %89 {offsets = [0, 8], sizes = [16, 1], strides = [1, 1]} : vector<16x9xf32> to vector<16x1xf32>
    %93 = vector.broadcast %92 : vector<16x1xf32> to vector<16x2xf32>
    %94 = arith.addf %91, %93 : vector<16x2xf32>
    %cst_29 = arith.constant 0.000000e+00 : f32
    %95 = vector.broadcast %cst_29 : f32 to vector<16x2xf32>
    %96 = arith.maximumf %94, %95 : vector<16x2xf32>
    %c0_30 = arith.constant 0 : index
    %c0_31 = arith.constant 0 : index
    %97 = vector.load %arg8[%c0_30, %c0_31] : memref<8x17xf32, #tpu.memory_space<vmem>>, vector<8x17xf32>
    %98 = vector.extract_strided_slice %97 {offsets = [0, 0], sizes = [8, 16], strides = [1, 1]} : vector<8x17xf32> to vector<8x16xf32>
    %cst_32 = arith.constant dense<0.000000e+00> : vector<8x2xf32>
    %99 = tpu.matmul %98, %96, %cst_32 {dimension_numbers = #tpu.dot_dimension_numbers<[1], [0], [0], [1], [0, 0, 1, 1], [], []>} : vector<8x16xf32>, vector<16x2xf32>, vector<8x2xf32> -> vector<8x2xf32>
    %100 = vector.extract_strided_slice %97 {offsets = [0, 16], sizes = [8, 1], strides = [1, 1]} : vector<8x17xf32> to vector<8x1xf32>
    %101 = vector.broadcast %100 : vector<8x1xf32> to vector<8x2xf32>
    %102 = arith.addf %99, %101 : vector<8x2xf32>
    %cst_33 = arith.constant 0.000000e+00 : f32
    %103 = vector.broadcast %cst_33 : f32 to vector<8x2xf32>
    %104 = arith.maximumf %102, %103 : vector<8x2xf32>
    %c0_34 = arith.constant 0 : index
    %c0_35 = arith.constant 0 : index
    %105 = vector.load %arg9[%c0_34, %c0_35] : memref<8x2xf32, #tpu.memory_space<vmem>>, vector<8x2xf32>
    tpu.vector_store %arg9[%c0_34, %c0_35], %104 {strides = array<i32>} : memref<8x2xf32, #tpu.memory_space<vmem>>, vector<8x2xf32>,
    return
  }
}

</mosaic_0001>

<bundles_post_ra>
// kernel: frap_forward.1
= control target key start
LH: loop header
LB: loop body
LE: loop exit
PB: predicated region body
PF: predicated region fallthrough
CT: control target
= control target key end

     0   :  { %v421_v2 = vmov 8   ;;  %vm74_vm0 = vcmask 1043456   ;;  %vm88_vm1 = vcmask 64512   ;;  %s422_s26 = smov 8   ;;  %vm133_vm2 = vcmask 130048   ;;  %s621_s0 = inlined_call_operand.vmem [shape: f32[2,8], index: 0, kind: input, shape index: {}]   ;;  %s622_s1 = inlined_call_operand.vmem [shape: f32[32,8], index: 1, kind: input, shape index: {}]   ;;  %s623_s2 = inlined_call_operand.vmem [shape: f32[16,9], index: 2, kind: input, shape index: {}]   ;;  %s624_s7 = inlined_call_operand.vmem [shape: f32[16,9], index: 7, kind: input, shape index: {}]   ;;  %s625_s3 = inlined_call_operand.vmem [shape: f32[16,140], index: 3, kind: input, shape index: {}]   ;;  %s626_s5 = inlined_call_operand.vmem [shape: f32[140,56], index: 5, kind: input, shape index: {}]   ;;  %s627_s6 = inlined_call_operand.vmem [shape: f32[56,7], index: 6, kind: input, shape index: {}]   ;;  %s628_s4 = inlined_call_operand.vmem [shape: f32[11,140], index: 4, kind: input, shape index: {}]   ;;  %s629_s8 = inlined_call_operand.vmem [shape: f32[8,17], index: 8, kind: input, shape index: {}]   ;;  %s630_s9 = inlined_call_operand.vmem [shape: f32[8,2], index: 9, kind: output, shape index: {}]  }
   0x1   :  { %v32_v0 = vld [vmem:[%s621_s0] sm:$0x3]  ;;  %418 = vset.pattern.permute.xlu0 %v421_v2  ;;  %419 = vset.pattern.permute.xlu2 %v421_v2  ;;  %v35_v3 = vld [vmem:[%s622_s1 + $0x10] sm:$0xff]  ;;  %v77_v8 = vld [vmem:[%s623_s2 + $0x8] sm:$0xff]  ;;  %v423_v63 = vmov 0.0   ;;  %vm213_vm3 = vcmask 97280  }
   0x2   :  { %v33_v1 = vld [vmem:[%s622_s1] sm:$0xff]  ;;  %v37_v4 = vperm.slane %v32_v0, 0  ;;  %v54_v6 = vperm.slane %v32_v0, 1  ;;  %v57_v7 = vrot.slane %v35_v3, 2  ;;  %85 = vperm.xlu0 %418, %v77_v8   ;;  %v34_v15 = vld [vmem:[%s622_s1 + $0x8] sm:$0xff]  ;;  %v36_v16 = vld [vmem:[%s622_s1 + $0x18] sm:$0xff] }
   0x3   :  { %v40_v5 = vrot.slane %v33_v1, 2  ;;  %v76_v21 = vld [vmem:[%s623_s2] sm:$0xff]  ;;  %v129_v37 = vld [vmem:[%s625_s3 + $0x10] sm:$0xff]  ;;  %v130_v38 = vld [vmem:[%s625_s3 + $0x18] sm:$0xff]  ;;  %vm283_vm4 = vcmask 457728   ;;  %vm315_vm5 = vcmask 56320  }
   0x4   :  { %v38_v9 = vmul.f32 %v37_v4, %v33_v1  ;;  %v55_v10 = vmul.f32 %v54_v6, %v35_v3  ;;  %v499_v30 = vld [vmem:[%s624_s7] sm:$0xff]  ;;  %154 = vmatpush.msra.mxu1 %v129_v37  ;;  %177 = vmatpush.msra.mxu2 %v130_v38  ;;  %v128_v45 = vld [vmem:[%s625_s3 + $0x8] sm:$0xff]  ;;  %v209_v46 = vld [vmem:[%s626_s5 + $0x78] sm:$0xff]  ;;  %vm322_vm6 = vcmask 7168   ;;  %vm394_vm7 = vcmask 15360  }
   0x5   :  { %v127_v44 = vld [vmem:[%s625_s3] sm:$0xff]  ;;  %v208_v47 = vld [vmem:[%s626_s5 + $0x70] sm:$0xff]  ;;  %223 = vmatpush.msra.mxu3 %v209_v46  ;;  %v207_v48 = vld [vmem:[%s626_s5 + $0x68] sm:$0xff] }
   0x6   :  { %v42_v11 = vadd.f32 %v40_v5, %v38_v9  ;;  %v59_v12 = vadd.f32 %v57_v7, %v55_v10  ;;  %155 = vmatpush.msra.mxu1 %v127_v44  ;;  %178 = vmatpush.msra.mxu2 %v128_v45  ;;  %v206_v49 = vld [vmem:[%s626_s5 + $0x60] sm:$0xff]  ;;  %v205_v50 = vld [vmem:[%s626_s5 + $0x58] sm:$0xff]  ;;  %v204_v51 = vld [vmem:[%s626_s5 + $0x50] sm:$0xff] }
   0x7   :  { %224 = vmatpush.msra.mxu3 %v208_v47  ;;  %v203_v52 = vld [vmem:[%s626_s5 + $0x48] sm:$0xff]  ;;  %v202_v53 = vld [vmem:[%s626_s5 + $0x40] sm:$0xff]  ;;  %v201_v55 = vld [vmem:[%s626_s5 + $0x38] sm:$0xff] }
   0x8   :  { %v43_v13 = vmax.f32 %v42_v11, 0.0  ;;  %v60_v14 = vmax.f32 %v59_v12, 0.0  ;;  %v200_v56 = vld [vmem:[%s626_s5 + $0x30] sm:$0xff]  ;;  %v199_v58 = vld [vmem:[%s626_s5 + $0x28] sm:$0xff]  ;;  %v198_v59 = vld [vmem:[%s626_s5 + $0x20] sm:$0xff] }
   0x9   :  { %225 = vmatpush.msra.mxu3 %v207_v48  ;;  %v197_v0 = vld [vmem:[%s626_s5 + $0x18] sm:$0xff]  ;;  %v195_v2 = vld [vmem:[%s626_s5 + $0x8] sm:$0xff]  ;;  %v210_v5 = vld [vmem:[%s626_s5 + $0x80] sm:$0xff] }
   0xa   :  { %v44_v17 = vperm.slane %v43_v13, 0  ;;  %v46_v18 = vperm.slane %v43_v13, 1  ;;  %v61_v19 = vperm.slane %v60_v14, 0  ;;  %v63_v20 = vperm.slane %v60_v14, 1  ;;  %80 = vperm.xlu0 %418, %v76_v21   ;;  %v211_v4 = vld [vmem:[%s626_s5 + $0x88] sm:$0xf] }
   0xb   :  { %226 = vmatpush.msra.mxu3 %v206_v49  ;;  %v277_v6 = vld [vmem:[%s627_s6 + $0x30] sm:$0xff]  ;;  %v276_v7 = vld [vmem:[%s627_s6 + $0x28] sm:$0xff]  ;;  %v126_v12 = vld [vmem:[%s628_s4 + $0x18] sm:$0x7] }
   0xc   :  { %v45_v22 = vmul.f32 %v44_v17, %v33_v1  ;;  %v47_v23 = vmul.f32 %v46_v18, %v34_v15  ;;  %v62_v24 = vmul.f32 %v61_v19, %v35_v3  ;;  %v64_v25 = vmul.f32 %v63_v20, %v36_v16  ;;  %v196_v1 = vld [vmem:[%s626_s5 + $0x10] sm:$0xff]  ;;  %v194_v3 = vld [vmem:[%s626_s5] sm:$0xff]  ;;  %299 = vmatpush.msrb.mxu1 %v277_v6  ;;  %v124_v20 = vld [vmem:[%s628_s4 + $0x8] sm:$0xff] }
   0xd   :  { %227 = vmatpush.msra.mxu3 %v205_v50  ;;  %v125_v9 = vld [vmem:[%s628_s4 + $0x10] sm:$0x7]  ;;  %v123_v14 = vld [vmem:[%s628_s4] sm:$0xff] }
   0xe   :  { %v49_v26 = vrot.slane %v47_v23, 4  ;;  %v66_v27 = vrot.slane %v64_v25, 4  ;;  %300 = vmatpush.msrb.mxu1 %v276_v7  ;;  %v131_v10 = vperm.slane %v125_v9, 0  ;;  %v212_v37 = vperm.slane %v125_v9, 1 }
   0xf   :  { %228 = vmatpush.msra.mxu3 %v204_v51 }
  0x10   :  { %v51_v28 = vadd.f32 %v49_v26, %v45_v22  ;;  %v68_v29 = vadd.f32 %v66_v27, %v62_v24 }
  0x11   :  { %229 = vmatpush.msra.mxu3 %v203_v52 }
  0x12   :  { %v52_v31 = vadd.f32 %v51_v28, %v34_v15  ;;  %v69_v32 = vadd.f32 %v68_v29, %v36_v16  ;;  %328 = vperm.xlu0 %418, %v499_v30   ;;  %v132_v16 = vperm.slane %v126_v12, 0 }
  0x13   :  { %230 = vmatpush.msra.mxu3 %v202_v53 }
  0x14   :  { %v53_v33 = vmax.f32 %v52_v31, 0.0  ;;  %v70_v34 = vmax.f32 %v69_v32, 0.0  ;;  %v274_v32 = vld [vmem:[%s627_s6 + $0x18] sm:$0xff] }
  0x15   :  { %231 = vmatpush.msra.mxu3 %v201_v55 }
  0x16   :  { %v72_v35 = vrot.slane %v53_v33, 4  ;;  %v273_v33 = vld [vmem:[%s627_s6 + $0x10] sm:$0xff] }
  0x17   :  { %232 = vmatpush.msra.mxu3 %v200_v56 }
  0x18   :  { %v75_v36 = vsel %vm74_vm0, %v72_v35, %v70_v34  ;;  %v272_v34 = vld [vmem:[%s627_s6 + $0x8] sm:$0xff]  ;;  %v271_v35 = vld [vmem:[%s627_s6] sm:$0xff] }
  0x19   :  { %108 = vmatpush.msra.mxu0 %v75_v36  ;;  %233 = vmatpush.msra.mxu3 %v199_v58  ;;  %v279_v36 = vrot.slane %v125_v9, 2 }
  0x1a   :  { %400 = vmatmul.msk.f32.vlgmr.msra.gmra.mxu0 %vm88_vm1, %v76_v21 }
  0x1b   :  { %234 = vmatpush.msra.mxu3 %v198_v59  ;;  %404 = vmatpush.msk.msrb.mxu0 %vm74_vm0, %v211_v4  ;;  %412 = vpush %v279_v36 }
  0x1d   :  { %235 = vmatpush.msra.mxu3 %v197_v0  ;;  %261 = vmatpush.msrb.mxu0 %v210_v5 }
  0x1f   :  { %236 = vmatpush.msra.mxu3 %v196_v1 }
  0x21   :  { %237 = vmatpush.msra.mxu3 %v195_v2 }
  0x22   :  { %401 = vmatmul.msk.f32.gmra.mxu0 %vm88_vm1, %v77_v8  ;;  %v275_v8 = vld [vmem:[%s627_s6 + $0x20] sm:$0xff] }
  0x23   :  { %238 = vmatpush.msra.mxu3 %v194_v3  ;;  %301 = vmatpush.msrb.mxu1 %v275_v8 }
  0x25   :  { %302 = vmatpush.msrb.mxu1 %v274_v32 }
  0x27   :  { %303 = vmatpush.msrb.mxu1 %v273_v33 }
  0x29   :  { %304 = vmatpush.msrb.mxu1 %v272_v34 }
  0x2b   :  { %305 = vmatpush.msrb.mxu1 %v271_v35 }
  0x4c   :  { %s413_s16 = spop %412 }
  0x4d   :  { %v281_v48 = vstv %s413_s16 }
  0x74   :  { %v86_v40 = vpop.permute.xlu0 %85 }
  0x7c   :  { %v81_v54 = vpop.permute.xlu0 %80 }
  0x84   :  { %v329_v1 = vpop.permute.xlu0 %328 }
  0x97   :  { %v110_v39 = vpop.f32.mrf.mxu0 }
  0x98   :  { %v111_v57 = vadd.f32 %v110_v39, %v81_v54 }
  0x9a   :  { %v116_v60 = vmax.f32 %v111_v57, 0.0  ;;  %v325_v57 = vld [vmem:[%s624_s7 + $0x8] sm:$0xff] }
  0x9f   :  { %v113_v41 = vpop.f32.mrf.mxu0 }
  0xa0   :  { %v114_v42 = vadd.f32 %v113_v41, %v86_v40 }
  0xa2   :  { %v117_v43 = vmax.f32 %v114_v42, 0.0 }
  0xa4   :  { %119 = vrot.lane.b32.xlu1 %v117_v43, %s422_s26 }
 0x116   :  { %v120_v61 = vpop.permute.xlu1 %119 }
 0x117   :  { %v122_v62 = vsel %vm88_vm1, %v116_v60, %v120_v61  ;;  %v365_v61 = vld [vmem:[%s629_s8] sm:$0xff] }
 0x118   :  { %402 = vmatmul.msk.f32.vlgmr.msra.gmra.mxu1 %vm133_vm2, %v122_v62  ;;  %403 = vmatmul.msk.f32.vlgmr.msra.gmra.mxu2 %vm133_vm2, %v122_v62  ;;  %v424_v62 = vmov 16  }
 0x119   :  { %420 = vset.pattern.permute.xlu0 %v424_v62 }
 0x11a   :  { %368 = vperm.xlu0 %420, %v365_v61  }
 0x120   :  { %159 = vmatmul.f32.gmra.mxu1 %v423_v63  ;;  %182 = vmatmul.f32.gmra.mxu2 %v423_v63 }
 0x195   :  { %v157_v11 = vpop.f32.mrf.mxu1 }
 0x196   :  { %v158_v13 = vadd.f32 %v157_v11, %v131_v10 }
 0x198   :  { %v186_v15 = vmax.f32 %v158_v13, 0.0 }
 0x19a   :  { %v190_v17 = vmul.f32 %v186_v15, %v123_v14 }
 0x19b   :  { %v180_v18 = vpop.f32.mrf.mxu2 }
 0x19c   :  { %v181_v19 = vadd.f32 %v180_v18, %v132_v16  ;;  %239 = vmatmul.f32.vlgmr.msra.gmra.mxu3 %v190_v17 }
 0x19d   :  { %v160_v21 = vpop.f32.mrf.mxu1 }
 0x19e   :  { %v187_v22 = vmax.f32 %v181_v19, 0.0  ;;  %v161_v23 = vadd.f32 %v160_v21, %v131_v10 }
 0x1a0   :  { %v191_v24 = vmul.f32 %v187_v22, %v124_v20  ;;  %v188_v25 = vmax.f32 %v161_v23, 0.0 }
 0x1a2   :  { %405 = vmatmul.msk.f32.vlgmr.msrb.gmra.mxu0 %vm213_vm3, %v191_v24  ;;  %v192_v26 = vmul.f32 %v188_v25, %v123_v14 }
 0x1a3   :  { %v183_v27 = vpop.f32.mrf.mxu2 }
 0x1a4   :  { %242 = vmatmul.f32.gmra.mxu3 %v192_v26  ;;  %v184_v28 = vadd.f32 %v183_v27, %v132_v16 }
 0x1a6   :  { %v189_v29 = vmax.f32 %v184_v28, 0.0 }
 0x1a8   :  { %v193_v31 = vmul.f32 %v189_v29, %v124_v20 }
 0x1aa   :  { %406 = vmatmul.msk.f32.gmra.mxu0 %vm213_vm3, %v193_v31 }
 0x21f   :  { %v240_v38 = vpop.f32.mrf.mxu3  ;;  %v263_v39 = vpop.f32.mrf.mxu0 }
 0x220   :  { %v241_v40 = vadd.f32 %v240_v38, %v212_v37 }
 0x222   :  { %v264_v41 = vadd.f32 %v263_v39, %v241_v40 }
 0x224   :  { %v269_v42 = vmax.f32 %v264_v41, 0.0 }
 0x226   :  { %407 = vmatmul.msk.f32.vlgmr.msrb.gmra.mxu1 %vm283_vm4, %v269_v42 }
 0x227   :  { %v243_v43 = vpop.f32.mrf.mxu3  ;;  %v266_v44 = vpop.f32.mrf.mxu0 }
 0x228   :  { %v244_v45 = vadd.f32 %v243_v43, %v212_v37 }
 0x22a   :  { %v267_v46 = vadd.f32 %v266_v44, %v244_v45 }
 0x22c   :  { %v270_v47 = vmax.f32 %v267_v46, 0.0 }
 0x22e   :  { %408 = vmatmul.msk.f32.gmra.mxu1 %vm283_vm4, %v270_v47 }
 0x2a3   :  { %v307_v49 = vpop.f32.mrf.mxu1 }
 0x2a4   :  { %v308_v50 = vadd.f32 %v307_v49, %v281_v48 }
 0x2a6   :  { %v313_v51 = vmax.f32 %v308_v50, 0.0 }
 0x2a8   :  { %v316_v52 = vsel %vm315_vm5, %v313_v51, 0.0 }
 0x2a9   :  { %317 = vadd.xlane.f32.xlu1 %v316_v52 }
 0x2ab   :  { %v310_v53 = vpop.f32.mrf.mxu1 }
 0x2ac   :  { %v311_v54 = vadd.f32 %v310_v53, %v281_v48 }
 0x2ae   :  { %v314_v55 = vmax.f32 %v311_v54, 0.0 }
 0x2b0   :  { %v319_v56 = vsel %vm315_vm5, %v314_v55, 0.0 }
 0x2b1   :  { %320 = vadd.xlane.f32.xlu2 %v319_v56 }
 0x2c9   :  { %333 = vperm.xlu2 %419, %v325_v57  }
 0x31c   :  { %v318_v58 = vpop.xlane.xlu1 %317 }
 0x324   :  { %v321_v59 = vpop.xlane.xlu2 %320 }
 0x325   :  { %v323_v60 = vsel %vm322_vm6, %v318_v58, %v321_v59 }
 0x326   :  { %355 = vmatpush.msrb.mxu2 %v323_v60 }
 0x327   :  { %409 = vmatmul.msk.f32.vlgmr.msrb.gmra.mxu2 %vm88_vm1, %v499_v30  ;;  %v369_v30 = vpop.permute.xlu0 %368 }
 0x32c   :  { %v334_v0 = vpop.permute.xlu2 %333 }
 0x32f   :  { %410 = vmatmul.msk.f32.gmra.mxu2 %vm88_vm1, %v325_v57 }
 0x3aa   :  { %v357_v63 = vpop.f32.mrf.mxu2 }
 0x3ab   :  { %v358_v3 = vadd.f32 %v357_v63, %v329_v1 }
 0x3ad   :  { %v363_v6 = vmax.f32 %v358_v3, 0.0 }
 0x3b2   :  { %v360_v2 = vpop.f32.mrf.mxu2 }
 0x3b3   :  { %v361_v4 = vadd.f32 %v360_v2, %v334_v0 }
 0x3b5   :  { %v364_v5 = vmax.f32 %v361_v4, 0.0 }
 0x3b7   :  { %387 = vmatpush.msra.mxu0 %v364_v5 }
 0x3b9   :  { %388 = vmatpush.msra.mxu0 %v363_v6 }
 0x3ba   :  { %411 = vmatmul.msk.f32.vlgmr.msra.gmra.mxu0 %vm133_vm2, %v365_v61 }
 0x437   :  { %v390_v7 = vpop.f32.mrf.mxu0 }
 0x438   :  { %v391_v8 = vadd.f32 %v390_v7, %v369_v30 }
 0x43a   :  { %v393_v9 = vmax.f32 %v391_v8, 0.0 }
 0x43c   :  { %395 = vst.msk [vmem:[%s630_s9] sm:$0xff] %vm394_vm7, %v393_v9 }

</bundles_post_ra>
